<compile_context>
chip_gen: v6e
topology: v6e:2x2x1
jax: 0.10.0
libtpu: 0.0.40
codegen_flags: <defaults>
</compile_context>

<pallas_src>
import functools

import jax
import jax.numpy as jnp
from jax.experimental import pallas as pl
from jax.experimental.pallas import tpu as pltpu


# ----------------------------- fused encoder kernel -----------------------------
def _gat_encoder_kernel(x_ref, mask_ref,
                        w1_ref, a1_ref, b1_ref,
                        w2_ref, a2_ref, b2_ref,
                        w3_ref, a3_ref, b3_ref,
                        out_ref, *, oc):
    n = x_ref.shape[0]
    # Additive softmax mask (0.0 on edges, ~-1e30 elsewhere), expanded from bf16 once.
    mask = mask_ref[...].astype(jnp.float32)

    def gat_layer(h_in, w, apack, bias, heads, f_out, relu):
        # Linear transform for all heads at once (MXU).
        xall = jnp.dot(h_in, w, preferred_element_type=jnp.float32)          # (N, heads*f_out)
        # Both attention projections for all heads via ONE packed block-diagonal matmul:
        # columns [0:heads) -> a_dst, columns [heads:2*heads) -> a_src (per source node).
        a_both = jnp.dot(xall, apack, preferred_element_type=jnp.float32)    # (N, 2*heads)
        a_dst = a_both[:, :heads]                                            # (N, heads)
        a_src = a_both[:, heads:].T                                          # (heads, N) tiny XLU transpose
        outs = []
        for hh in range(heads):                                              # heads static (=2)
            xh = xall[:, hh * f_out:(hh + 1) * f_out]                        # (N, f_out)
            # e[i, j] = LeakyReLU(a_dst[i] + a_src[j]), negative_slope = 0.2
            e = a_dst[:, hh:hh + 1] + a_src[hh:hh + 1, :]                    # (N, N)
            e = jnp.maximum(e, 0.2 * e)                                      # LeakyReLU, slope < 1
            logits = e + mask                                                # additive masking only
            m = jnp.max(logits, axis=1, keepdims=True)
            p = jnp.exp(logits - m)                                          # masked entries -> 0
            s = jnp.sum(p, axis=1, keepdims=True)
            inv = pl.reciprocal(s, approx=True)                              # EUP vrcp
            inv = inv * (2.0 - s * inv)                                      # one Newton step -> ~f32 accuracy
            # Normalize AFTER the aggregation matmul (row-scale commutes with p @ xh).
            outs.append(inv * jnp.dot(p, xh, preferred_element_type=jnp.float32))
        o = jnp.concatenate(outs, axis=1) + bias
        if relu:
            o = jnp.maximum(o, 0.0)
        return o

    x = x_ref[...]
    # conv1: heads=2, f_out=2*oc, concat -> (N, 4*oc), fused ReLU
    h = gat_layer(x, w1_ref[...], a1_ref[...], b1_ref[...], 2, 2 * oc, True)
    # conv2: heads=2, f_out=2*oc, concat -> (N, 4*oc), fused ReLU
    h = gat_layer(h, w2_ref[...], a2_ref[...], b2_ref[...], 2, 2 * oc, True)
    # conv_mu + conv_logstd fused as a 2-"head" concat layer -> (N, 2*oc) = [mu | logstd]
    o3 = gat_layer(h, w3_ref[...], a3_ref[...], b3_ref[...], 2, oc, False)

    # Lane-dense output: pad the (N, 2*oc) result to the full 128-lane slab (unmasked store).
    pad = out_ref.shape[1] - o3.shape[1]
    if pad > 0:
        o3 = jnp.concatenate([o3, jnp.zeros((n, pad), jnp.float32)], axis=1)
    out_ref[...] = o3.astype(out_ref.dtype)


# ----------------------------- parameter packing -----------------------------
def init_gat_params(key, f_in, f_out, heads, concat):
    """Deterministic synthetic GATConv parameters (glorot-ish scale)."""
    k1, k2, k3, k4 = jax.random.split(key, 4)
    scale_w = (2.0 / (f_in + heads * f_out)) ** 0.5
    w = scale_w * jax.random.normal(k1, (f_in, heads * f_out), jnp.float32)
    att_src = 0.1 * jax.random.normal(k2, (heads, f_out), jnp.float32)
    att_dst = 0.1 * jax.random.normal(k3, (heads, f_out), jnp.float32)
    out_dim = heads * f_out if concat else f_out
    bias = 0.01 * jax.random.normal(k4, (1, out_dim), jnp.float32)
    return (w, att_src, att_dst, bias)


def _pack_attn(att_dst, att_src):
    """(heads, f_out) attention vectors -> one packed block-diagonal (heads*f_out, 2*heads)
    projection matrix: columns [0:heads)=dst, [heads:2*heads)=src."""
    heads, f_out = att_dst.shape
    apack = jnp.zeros((heads * f_out, 2 * heads), jnp.float32)
    for h in range(heads):
        apack = apack.at[h * f_out:(h + 1) * f_out, h].set(att_dst[h])
        apack = apack.at[h * f_out:(h + 1) * f_out, heads + h].set(att_src[h])
    return apack


def pack_encoder_params(p1, p2, pmu, plog):
    """Pack per-layer params into the 9 kernel inputs (conv_mu/conv_logstd stacked)."""
    def pack_layer(w, att_src, att_dst, bias):
        return (w, _pack_attn(att_dst, att_src), bias)

    # conv_mu / conv_logstd: heads=1, concat=False == one "head" each; stack them as a
    # 2-"head" concat layer so they share one input matmul and one kernel epilogue.
    w_mu, as_mu, ad_mu, b_mu = pmu
    w_lg, as_lg, ad_lg, b_lg = plog
    w3 = jnp.concatenate([w_mu, w_lg], axis=1)
    as3 = jnp.concatenate([as_mu, as_lg], axis=0)
    ad3 = jnp.concatenate([ad_mu, ad_lg], axis=0)
    b3 = jnp.concatenate([b_mu, b_lg], axis=1)

    return pack_layer(*p1) + pack_layer(*p2) + pack_layer(w3, as3, ad3, b3)


# ----------------------------- jitted forward wrapper -----------------------------
@functools.partial(jax.jit, static_argnames=("oc",))
def gat_encoder_forward(x, adj, packed, oc):
    n, f_in = x.shape
    out_pad = pl.cdiv(2 * oc, 128) * 128            # lane-dense output slab, robust to any oc
    # bf16 additive mask: halves the only O(N^2) input's HBM/VMEM footprint; bf16 has the
    # same exponent range as f32, so -1e30 survives the cast and additive masking works.
    mask = jnp.where(adj > 0, 0.0, -1e30).astype(jnp.bfloat16)
    args = (x, mask) + tuple(packed)

    # Advisory cost estimate for XLA's scheduler.
    flops, trans = 0, 0
    for fin, heads, fout in ((f_in, 2, 2 * oc), (4 * oc, 2, 2 * oc), (4 * oc, 2, oc)):
        hf = heads * fout
        flops += 2 * n * fin * hf + 2 * n * hf * 2 * heads         # xall + packed attn proj
        flops += heads * (2 * n * n * fout + 5 * n * n + 3 * n * fout)
        trans += heads * (n * n + n)                               # exp + vrcp
    bytes_accessed = sum(int(a.size) * a.dtype.itemsize for a in args) + n * out_pad * 4

    out = pl.pallas_call(
        functools.partial(_gat_encoder_kernel, oc=oc),
        out_shape=jax.ShapeDtypeStruct((n, out_pad), jnp.float32),
        # No grid: single step, whole arrays resident in VMEM — avoids the degenerate-grid
        # double-buffering of the (N,N) mask (VMEM headroom matters most on v7x's 64 MiB).
        in_specs=[pl.BlockSpec(memory_space=pltpu.MemorySpace.VMEM) for _ in args],
        out_specs=pl.BlockSpec(memory_space=pltpu.MemorySpace.VMEM),
        compiler_params=pltpu.CompilerParams(vmem_limit_bytes=32 * 1024 * 1024),
        cost_estimate=pl.CostEstimate(flops=int(flops), transcendentals=int(trans),
                                      bytes_accessed=int(bytes_accessed)),
    )(*args)
    return out[:, :oc], out[:, oc:2 * oc]


class GATEncoderPallas:
    """Mirrors the PyTorch GATEncoder forward pass (eval-mode semantics)."""

    def __init__(self, in_channels, out_channels, key):
        ks = jax.random.split(key, 4)
        self.out_channels = out_channels
        # conv1: GATConv(in, 2*out, heads=2, concat=True)  -> dim 4*out
        self.p1 = init_gat_params(ks[0], in_channels, 2 * out_channels, 2, True)
        # conv2: GATConv(4*out, 2*out, heads=2, concat=True) -> dim 4*out
        self.p2 = init_gat_params(ks[1], 4 * out_channels, 2 * out_channels, 2, True)
        # conv_mu / conv_logstd: GATConv(4*out, out, heads=1, concat=False) -> dim out
        self.pmu = init_gat_params(ks[2], 4 * out_channels, out_channels, 1, False)
        self.plog = init_gat_params(ks[3], 4 * out_channels, out_channels, 1, False)
        self.packed = pack_encoder_params(self.p1, self.p2, self.pmu, self.plog)

    def __call__(self, x, adj):
        return gat_encoder_forward(x, adj, self.packed, self.out_channels)


# -------------------- plain-JAX reference (for correctness check) --------------------
def gat_conv_ref(x, adj, params, heads, f_out, concat, apply_relu=False):
    w, att_src, att_dst, bias = params
    xall = x @ w
    outs = []
    for h in range(heads):
        xh = xall[:, h * f_out:(h + 1) * f_out]
        a_src = xh @ att_src[h]
        a_dst = xh @ att_dst[h]
        e = a_dst[:, None] + a_src[None, :]
        e = jnp.where(e > 0, e, 0.2 * e)
        logits = jnp.where(adj > 0, e, -1e30)
        p = jnp.exp(logits - logits.max(axis=1, keepdims=True)) * adj
        alpha = p / p.sum(axis=1, keepdims=True)
        outs.append(alpha @ xh)
    o = jnp.concatenate(outs, axis=1) + bias if concat else sum(outs) / heads + bias
    return jnp.maximum(o, 0.0) if apply_relu else o


if __name__ == "__main__":
    key = jax.random.PRNGKey(0)
    N, in_channels, out_channels = 8, 4, 8
    kx, kp = jax.random.split(key)

    x = jax.random.normal(kx, (N, in_channels), jnp.float32)

    # deterministic edge_index [2, E]: directed ring both ways + a few chords
    src = jnp.array([0, 1, 2, 3, 4, 5, 6, 7, 1, 2, 3, 4, 5, 6, 7, 0, 0, 3, 2, 6], jnp.int32)
    dst = jnp.array([1, 2, 3, 4, 5, 6, 7, 0, 0, 1, 2, 3, 4, 5, 6, 7, 4, 7, 5, 1], jnp.int32)
    edge_index = jnp.stack([src, dst])  # row 0 = source, row 1 = target (PyG convention)

    # dense adjacency: adj[target, source] = 1; add self-loops (PyG default)
    adj = jnp.zeros((N, N), jnp.float32).at[edge_index[1], edge_index[0]].set(1.0)
    adj = jnp.maximum(adj, jnp.eye(N, dtype=jnp.float32))

    enc = GATEncoderPallas(in_channels, out_channels, kp)
    mu, logstd = enc(x, adj)
    jax.block_until_ready((mu, logstd))

    # sanity check vs plain-JAX reference (unfused, per-layer)
    h = gat_conv_ref(x, adj, enc.p1, 2, 2 * out_channels, True, True)
    h = gat_conv_ref(h, adj, enc.p2, 2, 2 * out_channels, True, True)
    mu_ref = gat_conv_ref(h, adj, enc.pmu, 1, out_channels, False)
    ls_ref = gat_conv_ref(h, adj, enc.plog, 1, out_channels, False)

    assert mu.shape == (N, out_channels) and logstd.shape == (N, out_channels)
    assert jnp.allclose(mu, mu_ref, atol=1e-4), float(jnp.max(jnp.abs(mu - mu_ref)))
    assert jnp.allclose(logstd, ls_ref, atol=1e-4), float(jnp.max(jnp.abs(logstd - ls_ref)))

    print("KERNEL_OK")
</pallas_src>

<mosaic_0001>
module attributes {stable_mosaic.version = 11 : i64} {
  func.func @_gat_encoder_kernel(%arg0: memref<8x4xf32, #tpu.memory_space<vmem>>, %arg1: memref<8x8xbf16, #tpu.memory_space<vmem>>, %arg2: memref<4x32xf32, #tpu.memory_space<vmem>>, %arg3: memref<32x4xf32, #tpu.memory_space<vmem>>, %arg4: memref<1x32xf32, #tpu.memory_space<vmem>>, %arg5: memref<32x32xf32, #tpu.memory_space<vmem>>, %arg6: memref<32x4xf32, #tpu.memory_space<vmem>>, %arg7: memref<1x32xf32, #tpu.memory_space<vmem>>, %arg8: memref<32x16xf32, #tpu.memory_space<vmem>>, %arg9: memref<16x4xf32, #tpu.memory_space<vmem>>, %arg10: memref<1x16xf32, #tpu.memory_space<vmem>>, %arg11: memref<8x128xf32, #tpu.memory_space<vmem>>) attributes {dimension_semantics = [], scalar_prefetch = 0 : i64, scratch_operands = 0 : i64, tpu.core_type = #tpu.core_type<tc>} {
    %c0 = arith.constant 0 : index
    %c0_0 = arith.constant 0 : index
    %0 = vector.load %arg1[%c0, %c0_0] : memref<8x8xbf16, #tpu.memory_space<vmem>>, vector<8x8xbf16>
    %1 = arith.extf %0 : vector<8x8xbf16> to vector<8x8xf32>
    %c0_1 = arith.constant 0 : index
    %c0_2 = arith.constant 0 : index
    %2 = vector.load %arg0[%c0_1, %c0_2] : memref<8x4xf32, #tpu.memory_space<vmem>>, vector<8x4xf32>
    %c0_3 = arith.constant 0 : index
    %c0_4 = arith.constant 0 : index
    %3 = vector.load %arg2[%c0_3, %c0_4] : memref<4x32xf32, #tpu.memory_space<vmem>>, vector<4x32xf32>
    %c0_5 = arith.constant 0 : index
    %c0_6 = arith.constant 0 : index
    %4 = vector.load %arg3[%c0_5, %c0_6] : memref<32x4xf32, #tpu.memory_space<vmem>>, vector<32x4xf32>
    %c0_7 = arith.constant 0 : index
    %c0_8 = arith.constant 0 : index
    %5 = vector.load %arg4[%c0_7, %c0_8] : memref<1x32xf32, #tpu.memory_space<vmem>>, vector<1x32xf32>
    %cst = arith.constant dense<0.000000e+00> : vector<8x32xf32>
    %6 = tpu.matmul %2, %3, %cst {dimension_numbers = #tpu.dot_dimension_numbers<[1], [0], [0], [1], [0, 0, 1, 1], [], []>} : vector<8x4xf32>, vector<4x32xf32>, vector<8x32xf32> -> vector<8x32xf32>
    %cst_9 = arith.constant dense<0.000000e+00> : vector<8x4xf32>
    %7 = tpu.matmul %6, %4, %cst_9 {dimension_numbers = #tpu.dot_dimension_numbers<[1], [0], [0], [1], [0, 0, 1, 1], [], []>} : vector<8x32xf32>, vector<32x4xf32>, vector<8x4xf32> -> vector<8x4xf32>
    %8 = vector.extract_strided_slice %7 {offsets = [0, 0], sizes = [8, 2], strides = [1, 1]} : vector<8x4xf32> to vector<8x2xf32>
    %9 = vector.extract_strided_slice %7 {offsets = [0, 2], sizes = [8, 2], strides = [1, 1]} : vector<8x4xf32> to vector<8x2xf32>
    %10 = tpu.transpose %9, [1, 0] : vector<8x2xf32> -> vector<2x8xf32>
    %11 = vector.extract_strided_slice %6 {offsets = [0, 0], sizes = [8, 16], strides = [1, 1]} : vector<8x32xf32> to vector<8x16xf32>
    %12 = vector.extract_strided_slice %8 {offsets = [0, 0], sizes = [8, 1], strides = [1, 1]} : vector<8x2xf32> to vector<8x1xf32>
    %13 = vector.extract_strided_slice %10 {offsets = [0, 0], sizes = [1, 8], strides = [1, 1]} : vector<2x8xf32> to vector<1x8xf32>
    %14 = vector.broadcast %12 : vector<8x1xf32> to vector<8x8xf32>
    %15 = vector.broadcast %13 : vector<1x8xf32> to vector<8x8xf32>
    %16 = arith.addf %14, %15 : vector<8x8xf32>
    %cst_10 = arith.constant 2.000000e-01 : f32
    %17 = vector.broadcast %cst_10 : f32 to vector<8x8xf32>
    %18 = arith.mulf %17, %16 : vector<8x8xf32>
    %19 = arith.maximumf %16, %18 : vector<8x8xf32>
    %20 = arith.addf %19, %1 : vector<8x8xf32>
    %cst_11 = arith.constant dense<0xFF800000> : vector<8xf32>
    %21 = vector.multi_reduction <maximumf>, %20, %cst_11 [1] : vector<8x8xf32> to vector<8xf32>
    %22 = vector.shape_cast %21 : vector<8xf32> to vector<8x1xf32>
    %23 = vector.broadcast %22 : vector<8x1xf32> to vector<8x8xf32>
    %24 = arith.subf %20, %23 : vector<8x8xf32>
    %25 = math.exp %24 : vector<8x8xf32>
    %cst_12 = arith.constant dense<0.000000e+00> : vector<8xf32>
    %26 = vector.multi_reduction <add>, %25, %cst_12 [1] : vector<8x8xf32> to vector<8xf32>
    %27 = vector.shape_cast %26 : vector<8xf32> to vector<8x1xf32>
    %28 = tpu.reciprocal %27 {approx = true} : vector<8x1xf32> -> vector<8x1xf32>
    %29 = arith.mulf %27, %28 : vector<8x1xf32>
    %cst_13 = arith.constant 2.000000e+00 : f32
    %30 = vector.broadcast %cst_13 : f32 to vector<8x1xf32>
    %31 = arith.subf %30, %29 : vector<8x1xf32>
    %32 = arith.mulf %28, %31 : vector<8x1xf32>
    %cst_14 = arith.constant dense<0.000000e+00> : vector<8x16xf32>
    %33 = tpu.matmul %25, %11, %cst_14 {dimension_numbers = #tpu.dot_dimension_numbers<[1], [0], [0], [1], [0, 0, 1, 1], [], []>} : vector<8x8xf32>, vector<8x16xf32>, vector<8x16xf32> -> vector<8x16xf32>
    %34 = vector.broadcast %32 : vector<8x1xf32> to vector<8x16xf32>
    %35 = arith.mulf %34, %33 : vector<8x16xf32>
    %36 = vector.extract_strided_slice %6 {offsets = [0, 16], sizes = [8, 16], strides = [1, 1]} : vector<8x32xf32> to vector<8x16xf32>
    %37 = vector.extract_strided_slice %8 {offsets = [0, 1], sizes = [8, 1], strides = [1, 1]} : vector<8x2xf32> to vector<8x1xf32>
    %38 = vector.extract_strided_slice %10 {offsets = [1, 0], sizes = [1, 8], strides = [1, 1]} : vector<2x8xf32> to vector<1x8xf32>
    %39 = vector.broadcast %37 : vector<8x1xf32> to vector<8x8xf32>
    %40 = vector.broadcast %38 : vector<1x8xf32> to vector<8x8xf32>
    %41 = arith.addf %39, %40 : vector<8x8xf32>
    %cst_15 = arith.constant 2.000000e-01 : f32
    %42 = vector.broadcast %cst_15 : f32 to vector<8x8xf32>
    %43 = arith.mulf %42, %41 : vector<8x8xf32>
    %44 = arith.maximumf %41, %43 : vector<8x8xf32>
    %45 = arith.addf %44, %1 : vector<8x8xf32>
    %cst_16 = arith.constant dense<0xFF800000> : vector<8xf32>
    %46 = vector.multi_reduction <maximumf>, %45, %cst_16 [1] : vector<8x8xf32> to vector<8xf32>
    %47 = vector.shape_cast %46 : vector<8xf32> to vector<8x1xf32>
    %48 = vector.broadcast %47 : vector<8x1xf32> to vector<8x8xf32>
    %49 = arith.subf %45, %48 : vector<8x8xf32>
    %50 = math.exp %49 : vector<8x8xf32>
    %cst_17 = arith.constant dense<0.000000e+00> : vector<8xf32>
    %51 = vector.multi_reduction <add>, %50, %cst_17 [1] : vector<8x8xf32> to vector<8xf32>
    %52 = vector.shape_cast %51 : vector<8xf32> to vector<8x1xf32>
    %53 = tpu.reciprocal %52 {approx = true} : vector<8x1xf32> -> vector<8x1xf32>
    %54 = arith.mulf %52, %53 : vector<8x1xf32>
    %cst_18 = arith.constant 2.000000e+00 : f32
    %55 = vector.broadcast %cst_18 : f32 to vector<8x1xf32>
    %56 = arith.subf %55, %54 : vector<8x1xf32>
    %57 = arith.mulf %53, %56 : vector<8x1xf32>
    %cst_19 = arith.constant dense<0.000000e+00> : vector<8x16xf32>
    %58 = tpu.matmul %50, %36, %cst_19 {dimension_numbers = #tpu.dot_dimension_numbers<[1], [0], [0], [1], [0, 0, 1, 1], [], []>} : vector<8x8xf32>, vector<8x16xf32>, vector<8x16xf32> -> vector<8x16xf32>
    %59 = vector.broadcast %57 : vector<8x1xf32> to vector<8x16xf32>
    %60 = arith.mulf %59, %58 : vector<8x16xf32>
    %61 = tpu.concatenate %35, %60 in 1 : vector<8x16xf32>, vector<8x16xf32> -> vector<8x32xf32>
    %62 = vector.broadcast %5 : vector<1x32xf32> to vector<8x32xf32>
    %63 = arith.addf %61, %62 : vector<8x32xf32>
    %cst_20 = arith.constant 0.000000e+00 : f32
    %64 = vector.broadcast %cst_20 : f32 to vector<8x32xf32>
    %65 = arith.maximumf %63, %64 : vector<8x32xf32>
    %c0_21 = arith.constant 0 : index
    %c0_22 = arith.constant 0 : index
    %66 = vector.load %arg5[%c0_21, %c0_22] : memref<32x32xf32, #tpu.memory_space<vmem>>, vector<32x32xf32>
    %c0_23 = arith.constant 0 : index
    %c0_24 = arith.constant 0 : index
    %67 = vector.load %arg6[%c0_23, %c0_24] : memref<32x4xf32, #tpu.memory_space<vmem>>, vector<32x4xf32>
    %c0_25 = arith.constant 0 : index
    %c0_26 = arith.constant 0 : index
    %68 = vector.load %arg7[%c0_25, %c0_26] : memref<1x32xf32, #tpu.memory_space<vmem>>, vector<1x32xf32>
    %cst_27 = arith.constant dense<0.000000e+00> : vector<8x32xf32>
    %69 = tpu.matmul %65, %66, %cst_27 {dimension_numbers = #tpu.dot_dimension_numbers<[1], [0], [0], [1], [0, 0, 1, 1], [], []>} : vector<8x32xf32>, vector<32x32xf32>, vector<8x32xf32> -> vector<8x32xf32>
    %cst_28 = arith.constant dense<0.000000e+00> : vector<8x4xf32>
    %70 = tpu.matmul %69, %67, %cst_28 {dimension_numbers = #tpu.dot_dimension_numbers<[1], [0], [0], [1], [0, 0, 1, 1], [], []>} : vector<8x32xf32>, vector<32x4xf32>, vector<8x4xf32> -> vector<8x4xf32>
    %71 = vector.extract_strided_slice %70 {offsets = [0, 0], sizes = [8, 2], strides = [1, 1]} : vector<8x4xf32> to vector<8x2xf32>
    %72 = vector.extract_strided_slice %70 {offsets = [0, 2], sizes = [8, 2], strides = [1, 1]} : vector<8x4xf32> to vector<8x2xf32>
    %73 = tpu.transpose %72, [1, 0] : vector<8x2xf32> -> vector<2x8xf32>
    %74 = vector.extract_strided_slice %69 {offsets = [0, 0], sizes = [8, 16], strides = [1, 1]} : vector<8x32xf32> to vector<8x16xf32>
    %75 = vector.extract_strided_slice %71 {offsets = [0, 0], sizes = [8, 1], strides = [1, 1]} : vector<8x2xf32> to vector<8x1xf32>
    %76 = vector.extract_strided_slice %73 {offsets = [0, 0], sizes = [1, 8], strides = [1, 1]} : vector<2x8xf32> to vector<1x8xf32>
    %77 = vector.broadcast %75 : vector<8x1xf32> to vector<8x8xf32>
    %78 = vector.broadcast %76 : vector<1x8xf32> to vector<8x8xf32>
    %79 = arith.addf %77, %78 : vector<8x8xf32>
    %cst_29 = arith.constant 2.000000e-01 : f32
    %80 = vector.broadcast %cst_29 : f32 to vector<8x8xf32>
    %81 = arith.mulf %80, %79 : vector<8x8xf32>
    %82 = arith.maximumf %79, %81 : vector<8x8xf32>
    %83 = arith.addf %82, %1 : vector<8x8xf32>
    %cst_30 = arith.constant dense<0xFF800000> : vector<8xf32>
    %84 = vector.multi_reduction <maximumf>, %83, %cst_30 [1] : vector<8x8xf32> to vector<8xf32>
    %85 = vector.shape_cast %84 : vector<8xf32> to vector<8x1xf32>
    %86 = vector.broadcast %85 : vector<8x1xf32> to vector<8x8xf32>
    %87 = arith.subf %83, %86 : vector<8x8xf32>
    %88 = math.exp %87 : vector<8x8xf32>
    %cst_31 = arith.constant dense<0.000000e+00> : vector<8xf32>
    %89 = vector.multi_reduction <add>, %88, %cst_31 [1] : vector<8x8xf32> to vector<8xf32>
    %90 = vector.shape_cast %89 : vector<8xf32> to vector<8x1xf32>
    %91 = tpu.reciprocal %90 {approx = true} : vector<8x1xf32> -> vector<8x1xf32>
    %92 = arith.mulf %90, %91 : vector<8x1xf32>
    %cst_32 = arith.constant 2.000000e+00 : f32
    %93 = vector.broadcast %cst_32 : f32 to vector<8x1xf32>
    %94 = arith.subf %93, %92 : vector<8x1xf32>
    %95 = arith.mulf %91, %94 : vector<8x1xf32>
    %cst_33 = arith.constant dense<0.000000e+00> : vector<8x16xf32>
    %96 = tpu.matmul %88, %74, %cst_33 {dimension_numbers = #tpu.dot_dimension_numbers<[1], [0], [0], [1], [0, 0, 1, 1], [], []>} : vector<8x8xf32>, vector<8x16xf32>, vector<8x16xf32> -> vector<8x16xf32>
    %97 = vector.broadcast %95 : vector<8x1xf32> to vector<8x16xf32>
    %98 = arith.mulf %97, %96 : vector<8x16xf32>
    %99 = vector.extract_strided_slice %69 {offsets = [0, 16], sizes = [8, 16], strides = [1, 1]} : vector<8x32xf32> to vector<8x16xf32>
    %100 = vector.extract_strided_slice %71 {offsets = [0, 1], sizes = [8, 1], strides = [1, 1]} : vector<8x2xf32> to vector<8x1xf32>
    %101 = vector.extract_strided_slice %73 {offsets = [1, 0], sizes = [1, 8], strides = [1, 1]} : vector<2x8xf32> to vector<1x8xf32>
    %102 = vector.broadcast %100 : vector<8x1xf32> to vector<8x8xf32>
    %103 = vector.broadcast %101 : vector<1x8xf32> to vector<8x8xf32>
    %104 = arith.addf %102, %103 : vector<8x8xf32>
    %cst_34 = arith.constant 2.000000e-01 : f32
    %105 = vector.broadcast %cst_34 : f32 to vector<8x8xf32>
    %106 = arith.mulf %105, %104 : vector<8x8xf32>
    %107 = arith.maximumf %104, %106 : vector<8x8xf32>
    %108 = arith.addf %107, %1 : vector<8x8xf32>
    %cst_35 = arith.constant dense<0xFF800000> : vector<8xf32>
    %109 = vector.multi_reduction <maximumf>, %108, %cst_35 [1] : vector<8x8xf32> to vector<8xf32>
    %110 = vector.shape_cast %109 : vector<8xf32> to vector<8x1xf32>
    %111 = vector.broadcast %110 : vector<8x1xf32> to vector<8x8xf32>
    %112 = arith.subf %108, %111 : vector<8x8xf32>
    %113 = math.exp %112 : vector<8x8xf32>
    %cst_36 = arith.constant dense<0.000000e+00> : vector<8xf32>
    %114 = vector.multi_reduction <add>, %113, %cst_36 [1] : vector<8x8xf32> to vector<8xf32>
    %115 = vector.shape_cast %114 : vector<8xf32> to vector<8x1xf32>
    %116 = tpu.reciprocal %115 {approx = true} : vector<8x1xf32> -> vector<8x1xf32>
    %117 = arith.mulf %115, %116 : vector<8x1xf32>
    %cst_37 = arith.constant 2.000000e+00 : f32
    %118 = vector.broadcast %cst_37 : f32 to vector<8x1xf32>
    %119 = arith.subf %118, %117 : vector<8x1xf32>
    %120 = arith.mulf %116, %119 : vector<8x1xf32>
    %cst_38 = arith.constant dense<0.000000e+00> : vector<8x16xf32>
    %121 = tpu.matmul %113, %99, %cst_38 {dimension_numbers = #tpu.dot_dimension_numbers<[1], [0], [0], [1], [0, 0, 1, 1], [], []>} : vector<8x8xf32>, vector<8x16xf32>, vector<8x16xf32> -> vector<8x16xf32>
    %122 = vector.broadcast %120 : vector<8x1xf32> to vector<8x16xf32>
    %123 = arith.mulf %122, %121 : vector<8x16xf32>
    %124 = tpu.concatenate %98, %123 in 1 : vector<8x16xf32>, vector<8x16xf32> -> vector<8x32xf32>
    %125 = vector.broadcast %68 : vector<1x32xf32> to vector<8x32xf32>
    %126 = arith.addf %124, %125 : vector<8x32xf32>
    %cst_39 = arith.constant 0.000000e+00 : f32
    %127 = vector.broadcast %cst_39 : f32 to vector<8x32xf32>
    %128 = arith.maximumf %126, %127 : vector<8x32xf32>
    %c0_40 = arith.constant 0 : index
    %c0_41 = arith.constant 0 : index
    %129 = vector.load %arg8[%c0_40, %c0_41] : memref<32x16xf32, #tpu.memory_space<vmem>>, vector<32x16xf32>
    %c0_42 = arith.constant 0 : index
    %c0_43 = arith.constant 0 : index
    %130 = vector.load %arg9[%c0_42, %c0_43] : memref<16x4xf32, #tpu.memory_space<vmem>>, vector<16x4xf32>
    %c0_44 = arith.constant 0 : index
    %c0_45 = arith.constant 0 : index
    %131 = vector.load %arg10[%c0_44, %c0_45] : memref<1x16xf32, #tpu.memory_space<vmem>>, vector<1x16xf32>
    %cst_46 = arith.constant dense<0.000000e+00> : vector<8x16xf32>
    %132 = tpu.matmul %128, %129, %cst_46 {dimension_numbers = #tpu.dot_dimension_numbers<[1], [0], [0], [1], [0, 0, 1, 1], [], []>} : vector<8x32xf32>, vector<32x16xf32>, vector<8x16xf32> -> vector<8x16xf32>
    %cst_47 = arith.constant dense<0.000000e+00> : vector<8x4xf32>
    %133 = tpu.matmul %132, %130, %cst_47 {dimension_numbers = #tpu.dot_dimension_numbers<[1], [0], [0], [1], [0, 0, 1, 1], [], []>} : vector<8x16xf32>, vector<16x4xf32>, vector<8x4xf32> -> vector<8x4xf32>
    %134 = vector.extract_strided_slice %133 {offsets = [0, 0], sizes = [8, 2], strides = [1, 1]} : vector<8x4xf32> to vector<8x2xf32>
    %135 = vector.extract_strided_slice %133 {offsets = [0, 2], sizes = [8, 2], strides = [1, 1]} : vector<8x4xf32> to vector<8x2xf32>
    %136 = tpu.transpose %135, [1, 0] : vector<8x2xf32> -> vector<2x8xf32>
    %137 = vector.extract_strided_slice %132 {offsets = [0, 0], sizes = [8, 8], strides = [1, 1]} : vector<8x16xf32> to vector<8x8xf32>
    %138 = vector.extract_strided_slice %134 {offsets = [0, 0], sizes = [8, 1], strides = [1, 1]} : vector<8x2xf32> to vector<8x1xf32>
    %139 = vector.extract_strided_slice %136 {offsets = [0, 0], sizes = [1, 8], strides = [1, 1]} : vector<2x8xf32> to vector<1x8xf32>
    %140 = vector.broadcast %138 : vector<8x1xf32> to vector<8x8xf32>
    %141 = vector.broadcast %139 : vector<1x8xf32> to vector<8x8xf32>
    %142 = arith.addf %140, %141 : vector<8x8xf32>
    %cst_48 = arith.constant 2.000000e-01 : f32
    %143 = vector.broadcast %cst_48 : f32 to vector<8x8xf32>
    %144 = arith.mulf %143, %142 : vector<8x8xf32>
    %145 = arith.maximumf %142, %144 : vector<8x8xf32>
    %146 = arith.addf %145, %1 : vector<8x8xf32>
    %cst_49 = arith.constant dense<0xFF800000> : vector<8xf32>
    %147 = vector.multi_reduction <maximumf>, %146, %cst_49 [1] : vector<8x8xf32> to vector<8xf32>
    %148 = vector.shape_cast %147 : vector<8xf32> to vector<8x1xf32>
    %149 = vector.broadcast %148 : vector<8x1xf32> to vector<8x8xf32>
    %150 = arith.subf %146, %149 : vector<8x8xf32>
    %151 = math.exp %150 : vector<8x8xf32>
    %cst_50 = arith.constant dense<0.000000e+00> : vector<8xf32>
    %152 = vector.multi_reduction <add>, %151, %cst_50 [1] : vector<8x8xf32> to vector<8xf32>
    %153 = vector.shape_cast %152 : vector<8xf32> to vector<8x1xf32>
    %154 = tpu.reciprocal %153 {approx = true} : vector<8x1xf32> -> vector<8x1xf32>
    %155 = arith.mulf %153, %154 : vector<8x1xf32>
    %cst_51 = arith.constant 2.000000e+00 : f32
    %156 = vector.broadcast %cst_51 : f32 to vector<8x1xf32>
    %157 = arith.subf %156, %155 : vector<8x1xf32>
    %158 = arith.mulf %154, %157 : vector<8x1xf32>
    %cst_52 = arith.constant dense<0.000000e+00> : vector<8x8xf32>
    %159 = tpu.matmul %151, %137, %cst_52 {dimension_numbers = #tpu.dot_dimension_numbers<[1], [0], [0], [1], [0, 0, 1, 1], [], []>} : vector<8x8xf32>, vector<8x8xf32>, vector<8x8xf32> -> vector<8x8xf32>
    %160 = vector.broadcast %158 : vector<8x1xf32> to vector<8x8xf32>
    %161 = arith.mulf %160, %159 : vector<8x8xf32>
    %162 = vector.extract_strided_slice %132 {offsets = [0, 8], sizes = [8, 8], strides = [1, 1]} : vector<8x16xf32> to vector<8x8xf32>
    %163 = vector.extract_strided_slice %134 {offsets = [0, 1], sizes = [8, 1], strides = [1, 1]} : vector<8x2xf32> to vector<8x1xf32>
    %164 = vector.extract_strided_slice %136 {offsets = [1, 0], sizes = [1, 8], strides = [1, 1]} : vector<2x8xf32> to vector<1x8xf32>
    %165 = vector.broadcast %163 : vector<8x1xf32> to vector<8x8xf32>
    %166 = vector.broadcast %164 : vector<1x8xf32> to vector<8x8xf32>
    %167 = arith.addf %165, %166 : vector<8x8xf32>
    %cst_53 = arith.constant 2.000000e-01 : f32
    %168 = vector.broadcast %cst_53 : f32 to vector<8x8xf32>
    %169 = arith.mulf %168, %167 : vector<8x8xf32>
    %170 = arith.maximumf %167, %169 : vector<8x8xf32>
    %171 = arith.addf %170, %1 : vector<8x8xf32>
    %cst_54 = arith.constant dense<0xFF800000> : vector<8xf32>
    %172 = vector.multi_reduction <maximumf>, %171, %cst_54 [1] : vector<8x8xf32> to vector<8xf32>
    %173 = vector.shape_cast %172 : vector<8xf32> to vector<8x1xf32>
    %174 = vector.broadcast %173 : vector<8x1xf32> to vector<8x8xf32>
    %175 = arith.subf %171, %174 : vector<8x8xf32>
    %176 = math.exp %175 : vector<8x8xf32>
    %cst_55 = arith.constant dense<0.000000e+00> : vector<8xf32>
    %177 = vector.multi_reduction <add>, %176, %cst_55 [1] : vector<8x8xf32> to vector<8xf32>
    %178 = vector.shape_cast %177 : vector<8xf32> to vector<8x1xf32>
    %179 = tpu.reciprocal %178 {approx = true} : vector<8x1xf32> -> vector<8x1xf32>
    %180 = arith.mulf %178, %179 : vector<8x1xf32>
    %cst_56 = arith.constant 2.000000e+00 : f32
    %181 = vector.broadcast %cst_56 : f32 to vector<8x1xf32>
    %182 = arith.subf %181, %180 : vector<8x1xf32>
    %183 = arith.mulf %179, %182 : vector<8x1xf32>
    %cst_57 = arith.constant dense<0.000000e+00> : vector<8x8xf32>
    %184 = tpu.matmul %176, %162, %cst_57 {dimension_numbers = #tpu.dot_dimension_numbers<[1], [0], [0], [1], [0, 0, 1, 1], [], []>} : vector<8x8xf32>, vector<8x8xf32>, vector<8x8xf32> -> vector<8x8xf32>
    %185 = vector.broadcast %183 : vector<8x1xf32> to vector<8x8xf32>
    %186 = arith.mulf %185, %184 : vector<8x8xf32>
    %187 = tpu.concatenate %161, %186 in 1 : vector<8x8xf32>, vector<8x8xf32> -> vector<8x16xf32>
    %188 = vector.broadcast %131 : vector<1x16xf32> to vector<8x16xf32>
    %189 = arith.addf %187, %188 : vector<8x16xf32>
    %cst_58 = arith.constant 0.000000e+00 : f32
    %190 = vector.broadcast %cst_58 : f32 to vector<8x112xf32>
    %191 = tpu.concatenate %189, %190 in 1 : vector<8x16xf32>, vector<8x112xf32> -> vector<8x128xf32>
    %c0_59 = arith.constant 0 : index
    %c0_60 = arith.constant 0 : index
    %192 = vector.load %arg11[%c0_59, %c0_60] : memref<8x128xf32, #tpu.memory_space<vmem>>, vector<8x128xf32>
    tpu.vector_store %arg11[%c0_59, %c0_60], %191 {strides = array<i32>} : memref<8x128xf32, #tpu.memory_space<vmem>>, vector<8x128xf32>,
    return
  }
}

</mosaic_0001>

<bundles_post_ra>
// kernel: gat_encoder_forward.1
= control target key start
LH: loop header
LB: loop body
LE: loop exit
PB: predicated region body
PF: predicated region fallthrough
CT: control target
= control target key end

     0   :  { %vm51_vm0 = vcmask 1043456   ;;  %vm47_vm1 = vcmask 31744   ;;  %v1442_v0 = vmov 0.0   ;;  %vm1443_vm2 = vmmov 0   ;;  %s1447_s27 = smov 112   ;;  %s1448_s23 = smov 16   ;;  %s1693_s2 = inlined_call_operand.vmem [shape: f32[4,32], index: 2, kind: input, shape index: {}]   ;;  %s1694_s0 = inlined_call_operand.vmem [shape: f32[8,4], index: 0, kind: input, shape index: {}]   ;;  %s1695_s3 = inlined_call_operand.vmem [shape: f32[32,4], index: 3, kind: input, shape index: {}]   ;;  %s1696_s1 = inlined_call_operand.vmem [shape: bf16[8,8], index: 1, kind: input, shape index: {}]   ;;  %s1697_s5 = inlined_call_operand.vmem [shape: f32[32,32], index: 5, kind: input, shape index: {}]   ;;  %s1698_s6 = inlined_call_operand.vmem [shape: f32[32,4], index: 6, kind: input, shape index: {}]   ;;  %s1699_s4 = inlined_call_operand.vmem [shape: f32[1,32], index: 4, kind: input, shape index: {}]   ;;  %s1700_s8 = inlined_call_operand.vmem [shape: f32[32,16], index: 8, kind: input, shape index: {}]   ;;  %s1701_s9 = inlined_call_operand.vmem [shape: f32[16,4], index: 9, kind: input, shape index: {}]   ;;  %s1702_s7 = inlined_call_operand.vmem [shape: f32[1,32], index: 7, kind: input, shape index: {}]   ;;  %s1703_s10 = inlined_call_operand.vmem [shape: f32[1,16], index: 10, kind: input, shape index: {}]   ;;  %s1704_s11 = inlined_call_operand.vmem [shape: f32[8,128], index: 11, kind: output, shape index: {}]  }
   0x1   :  { %1317 = vmatprep.subr.mxu0 %v1442_v0  ;;  %v41_v1 = vld [vmem:[%s1693_s2] sm:$0xf]  ;;  %1319 = vmatprep.mubr.msk.f32.mxu0 %vm1443_vm2, %v1442_v0  ;;  %v45_v3 = vld [vmem:[%s1695_s3 + $0x18] sm:$0xff]  ;;  %v44_v4 = vld [vmem:[%s1695_s3 + $0x10] sm:$0xff]  ;;  %v1444_v7 = vmov 1   ;;  %vm125_vm3 = vcmask 261120   ;;  %v239_v14 = vlaneseq }
   0x2   :  { %v40_v2 = vld [vmem:[%s1694_s0] sm:$0xff]  ;;  %1318 = vmatpush3.msk.msra.mxu0 %vm51_vm0, %v41_v1  ;;  %1322 = vmatprep.subr.mxu1 %v1442_v0  ;;  %v43_v5 = vld [vmem:[%s1695_s3 + $0x8] sm:$0xff]  ;;  %v1445_v10 = vmov 0   ;;  %vm247_vm4 = vcmask 64512   ;;  %v454_v46 = vld [vmem:[%s1697_s5 + $0x18] sm:$0xff]  ;;  %vm441_vm5 = vcmask 130048  }
   0x3   :  { %1320 = vmatmul.mubr.msk.f32.vlgmr.msra.gmra.mxu0 %vm47_vm1, %v40_v2  ;;  %1323 = vmatpush3.msra.mxu1 %v45_v3  ;;  %v42_v6 = vld [vmem:[%s1695_s3] sm:$0xff]  ;;  %s1446_s3 = smov 126   ;;  %v240_v15 = vshrl.u32 %v239_v14, 7  ;;  %v453_v49 = vld [vmem:[%s1697_s5 + $0x10] sm:$0xff]  ;;  %v452_v51 = vld [vmem:[%s1697_s5 + $0x8] sm:$0xff] }
   0x4   :  { %1324 = vmatprep.subr.mxu1 %v1442_v0  ;;  %1330 = vmatprep.mubr.msk.f32.mxu1 %vm1443_vm2, %v1442_v0  ;;  %v38_v23 = vld [vmem:[%s1696_s1] sm:$0xf]  ;;  %v458_v55 = vld [vmem:[%s1698_s6 + $0x18] sm:$0xff]  ;;  %v457_v56 = vld [vmem:[%s1698_s6 + $0x10] sm:$0xff] }
   0x5   :  { %1325 = vmatpush3.msra.mxu1 %v44_v4  ;;  %1333 = vmatprep.subr.mxu0 %v1442_v0  ;;  %v1551_v17 = vsub.s32 0, %v240_v15  ;;  %v1553_v18 = vsub.s32 1, %v240_v15  ;;  %v1560_v28 = vunpack.c.l.bf16 %v38_v23  ;;  %v451_v52 = vld [vmem:[%s1697_s5] sm:$0xff]  ;;  %v456_v58 = vld [vmem:[%s1698_s6 + $0x8] sm:$0xff] }
   0x6   :  { %1326 = vmatprep.subr.mxu1 %v1442_v0  ;;  %1335 = vmatprep.mubr.msk.f32.mxu0 %vm1443_vm2, %v1442_v0 }
   0x7   :  { %1327 = vmatpush3.msra.mxu1 %v43_v5  ;;  %1413 = vset.pattern.permute.xlu1 %v1444_v7 }
   0x8   :  { %1328 = vmatprep.subr.mxu1 %v1442_v0  ;;  %1412 = vset.pattern.permute.xlu0 %v1445_v10 }
   0x9   :  { %1329 = vmatpush3.msra.mxu1 %v42_v6  ;;  %v1269_v6 = vld [vmem:[%s1699_s4] ss:$0 sm:$0xff] }
   0xa   :  { %1343 = vmatprep.subr.mxu1 %v1442_v0 }
  0xc3   :  { %v121_v8 = vpop.f32.mrf.mxu0 }
  0xc4   :  { %1331 = vmatmul.mubr.msk.f32.vlgmr.msra.gmra.mxu1 %vm125_vm3, %v121_v8  ;;  %1334 = vmatpush3.msra.mxu0 %v121_v8 }
  0xc5   :  { %v1321_v9 = vpop.f32.mrf.mxu0  ;;  %1338 = vmatprep.subr.mxu0 %v1442_v0  ;;  %1351 = vmatprep.mubr.msk.f32.mxu1 %vm1443_vm2, %v1442_v0 }
  0xc6   :  { %1344 = vmatpush3.msra.mxu1 %v454_v46 }
  0xc7   :  { %1345 = vmatprep.subr.mxu1 %v1442_v0 }
  0xc8   :  { %1346 = vmatpush3.msra.mxu1 %v453_v49 }
  0xc9   :  { %1347 = vmatprep.subr.mxu1 %v1442_v0 }
  0xca   :  { %1348 = vmatpush3.msra.mxu1 %v452_v51  ;;  %v858_v51 = vld [vmem:[%s1700_s8 + $0x10] sm:$0xff] }
  0xcb   :  { %1349 = vmatprep.subr.mxu1 %v1442_v0 }
  0xcc   :  { %1350 = vmatpush3.msra.mxu1 %v451_v52 }
  0xcd   :  { %1365 = vmatprep.subr.mxu1 %v1442_v0 }
 0x184   :  { %v195_v11 = vpop.f32.mrf.mxu1 }
 0x185   :  { %336 = vperm.xlu1 %1413, %v195_v11   ;;  %200 = vrot.lane.b32.xlu0 %v195_v11, %s1446_s3 }
 0x186   :  { %v1332_v12 = vpop.f32.mrf.mxu1 }
 0x189   :  { %236 = vperm.xlu0 %1412, %v195_v11  }
 0x18d   :  { %1414 = vset.pattern.permute.xlu0 %v1444_v7 }
 0x1f7   :  { %v201_v13 = vpop.permute.xlu0 %200 }
 0x1f8   :  { %203 = vxpose.xlu1.b32.start.end [1/1] (short) (narrow) %v201_v13, 8  ;;  %v455_v13 = vld [vmem:[%s1698_s6] sm:$0xff] }
 0x200   :  { %v337_v16 = vpop.permute.xlu1 %336 }
 0x204   :  { %v237_v22 = vpop.permute.xlu0 %236 }
 0x216   :  { %360 = vrot.lane.b32.xlu1 %v121_v8, %s1447_s27 }
 0x274   :  { %v219_v19 = vpop.trf.xlu1 }
 0x275   :  { %v242_v20 = vrot.slane %v219_v19, %v1551_v17  ;;  %v342_v21 = vrot.slane %v219_v19, %v1553_v18 }
 0x277   :  { %v243_v24 = vadd.f32 %v242_v20, %v237_v22  ;;  %v343_v25 = vadd.f32 %v342_v21, %v337_v16 }
 0x279   :  { %v244_v26 = vmul.f32 0.2, %v243_v24  ;;  %v344_v27 = vmul.f32 0.2, %v343_v25 }
 0x27b   :  { %v245_v29 = vmax.f32 %v243_v24, %v244_v26  ;;  %v345_v30 = vmax.f32 %v343_v25, %v344_v27 }
 0x27d   :  { %v246_v31 = vadd.f32 %v245_v29, %v1560_v28  ;;  %v346_v33 = vadd.f32 %v345_v30, %v1560_v28 }
 0x27f   :  { %v248_v32 = vsel %vm247_vm4, %v246_v31, -inf  ;;  %v347_v34 = vsel %vm247_vm4, %v346_v33, -inf }
 0x280   :  { %249 = vmax.xlane.f32.xlu0 %v248_v32 }
 0x284   :  { %348 = vmax.xlane.f32.xlu0 %v347_v34 }
 0x288   :  { %v361_v42 = vpop.permute.xlu1 %360 }
 0x309   :  { %v250_v35 = vpop.xlane.xlu0 %249 }
 0x30a   :  { %v251_v36 = vsub.f32 %v246_v31, %v250_v35 }
 0x30c   :  { %v252_v37 = vmul.f32 1.442695, %v251_v36 }
 0x30d   :  { %v349_v38 = vpop.xlane.xlu0 %348 }
 0x30e   :  { %1418 = vpow2.f32 %v252_v37  ;;  %v350_v39 = vsub.f32 %v346_v33, %v349_v38 }
 0x310   :  { %v351_v40 = vmul.f32 1.442695, %v350_v39 }
 0x312   :  { %1420 = vpow2.f32 %v351_v40 }
 0x31b   :  { %v1419_v41 = vpop.eup %1418 }
 0x31c   :  { %1336 = vmatmul.mubr.msk.f32.vlgmr.msra.gmra.mxu0 %vm247_vm4, %v1419_v41  ;;  %v254_v45 = vsel %vm247_vm4, %v1419_v41, 0.0 }
 0x31d   :  { %1339 = vmatpush3.msra.mxu0 %v361_v42  ;;  %1340 = vmatprep.mubr.msk.f32.mxu0 %vm1443_vm2, %v1442_v0 }
 0x31e   :  { %1354 = vmatprep.subr.mxu0 %v1442_v0 }
 0x31f   :  { %v1421_v43 = vpop.eup %1420 }
 0x320   :  { %1341 = vmatmul.mubr.msk.f32.vlgmr.msra.gmra.mxu0 %vm247_vm4, %v1421_v43  ;;  %v353_v44 = vsel %vm247_vm4, %v1421_v43, 0.0 }
 0x321   :  { %354 = vadd.xlane.f32.xlu0 %v353_v44  ;;  %1362 = vmatprep.mubr.msk.f32.mxu0 %vm1443_vm2, %v1442_v0 }
 0x322   :  { %1355 = vmatpush3.msra.mxu0 %v458_v55 }
 0x323   :  { %1356 = vmatprep.subr.mxu0 %v1442_v0 }
 0x324   :  { %1357 = vmatpush3.msra.mxu0 %v457_v56  ;;  %v861_v56 = vld [vmem:[%s1701_s9 + $0x8] sm:$0xff] }
 0x325   :  { %255 = vadd.xlane.f32.xlu0 %v254_v45  ;;  %1358 = vmatprep.subr.mxu0 %v1442_v0 }
 0x326   :  { %1359 = vmatpush3.msra.mxu0 %v456_v58 }
 0x327   :  { %1360 = vmatprep.subr.mxu0 %v1442_v0 }
 0x328   :  { %1361 = vmatpush3.msra.mxu0 %v455_v13 }
 0x329   :  { %1370 = vmatprep.subr.mxu0 %v1442_v0 }
 0x3aa   :  { %v355_v47 = vpop.xlane.xlu0 %354 }
 0x3ab   :  { %1422 = vrcp.f32 %v355_v47 }
 0x3ae   :  { %v256_v63 = vpop.xlane.xlu0 %255 }
 0x3af   :  { %1424 = vrcp.f32 %v256_v63 }
 0x3b8   :  { %v1423_v48 = vpop.eup %1422 }
 0x3b9   :  { %v357_v50 = vmul.f32 %v1423_v48, %v355_v47 }
 0x3bb   :  { %v358_v53 = vsub.f32 2.0, %v357_v50 }
 0x3bc   :  { %v1425_v1 = vpop.eup %1424 }
 0x3bd   :  { %v359_v59 = vmul.f32 %v1423_v48, %v358_v53  ;;  %v258_v2 = vmul.f32 %v1425_v1, %v256_v63  ;;  %v859_v48 = vld [vmem:[%s1700_s8 + $0x18] sm:$0xff]  ;;  %v857_v53 = vld [vmem:[%s1700_s8 + $0x8] sm:$0xff] }
 0x3bf   :  { %v259_v3 = vsub.f32 2.0, %v258_v2 }
 0x3c1   :  { %v260_v4 = vmul.f32 %v1425_v1, %v259_v3 }
 0x3dc   :  { %v330_v54 = vpop.f32.mrf.mxu0 }
 0x3dd   :  { %v334_v5 = vmul.f32 %v330_v54, %v260_v4  ;;  %v856_v54 = vld [vmem:[%s1700_s8] sm:$0xff] }
 0x3de   :  { %v1337_v57 = vpop.f32.mrf.mxu0 }
 0x3df   :  { %v860_v57 = vld [vmem:[%s1701_s9] sm:$0xff] }
 0x3e0   :  { %v432_v60 = vpop.f32.mrf.mxu0 }
 0x3e1   :  { %v436_v61 = vmul.f32 %v432_v60, %v359_v59 }
 0x3e2   :  { %v1342_v62 = vpop.f32.mrf.mxu0 }
 0x3e3   :  { %438 = vrot.lane.b32.xlu0 %v436_v61, %s1448_s23 }
 0x455   :  { %v439_v8 = vpop.permute.xlu0 %438 }
 0x456   :  { %v442_v9 = vsel %vm441_vm5, %v334_v5, %v439_v8  ;;  %v1274_v8 = vld [vmem:[%s1702_s7] ss:$0 sm:$0xff]  ;;  %s1449_s7 = smov 120  }
 0x457   :  { %v449_v11 = vadd.f32 %v1269_v6, %v442_v9 }
 0x459   :  { %v450_v12 = vmax.f32 %v449_v11, 0.0 }
 0x45b   :  { %1352 = vmatmul.mubr.msk.f32.vlgmr.msra.gmra.mxu1 %vm125_vm3, %v450_v12 }
 0x45c   :  { %1367 = vmatprep.mubr.msk.f32.mxu1 %vm1443_vm2, %v1442_v0 }
 0x51b   :  { %v529_v14 = vpop.f32.mrf.mxu1 }
 0x51c   :  { %1363 = vmatmul.mubr.msk.f32.vlgmr.msra.gmra.mxu0 %vm125_vm3, %v529_v14  ;;  %1366 = vmatpush3.msra.mxu1 %v529_v14 }
 0x51d   :  { %v1353_v15 = vpop.f32.mrf.mxu1  ;;  %1372 = vmatprep.mubr.msk.f32.mxu0 %vm1443_vm2, %v1442_v0  ;;  %1375 = vmatprep.subr.mxu1 %v1442_v0 }
 0x5dc   :  { %v602_v16 = vpop.f32.mrf.mxu0 }
 0x5dd   :  { %742 = vperm.xlu0 %1414, %v602_v16   ;;  %607 = vrot.lane.b32.xlu1 %v602_v16, %s1446_s3 }
 0x5de   :  { %v1364_v19 = vpop.f32.mrf.mxu0 }
 0x5e1   :  { %1415 = vset.pattern.permute.xlu0 %v1445_v10 }
 0x5e2   :  { %643 = vperm.xlu0 %1415, %v602_v16  }
 0x64f   :  { %v608_v20 = vpop.permute.xlu1 %607 }
 0x650   :  { %610 = vxpose.xlu1.b32.start.end [1/1] (short) (narrow) %v608_v20, 8 }
 0x658   :  { %v743_v21 = vpop.permute.xlu0 %742 }
 0x65d   :  { %v644_v25 = vpop.permute.xlu0 %643 }
 0x66e   :  { %766 = vrot.lane.b32.xlu1 %v529_v14, %s1447_s27 }
 0x6cc   :  { %v626_v22 = vpop.trf.xlu1 }
 0x6cd   :  { %v649_v23 = vrot.slane %v626_v22, %v1551_v17  ;;  %v748_v24 = vrot.slane %v626_v22, %v1553_v18 }
 0x6cf   :  { %v650_v26 = vadd.f32 %v649_v23, %v644_v25  ;;  %v749_v27 = vadd.f32 %v748_v24, %v743_v21 }
 0x6d1   :  { %v651_v29 = vmul.f32 0.2, %v650_v26  ;;  %v750_v30 = vmul.f32 0.2, %v749_v27 }
 0x6d3   :  { %v751_v31 = vmax.f32 %v749_v27, %v750_v30  ;;  %v652_v32 = vmax.f32 %v650_v26, %v651_v29 }
 0x6d5   :  { %v752_v33 = vadd.f32 %v751_v31, %v1560_v28  ;;  %v653_v35 = vadd.f32 %v652_v32, %v1560_v28 }
 0x6d7   :  { %v753_v34 = vsel %vm247_vm4, %v752_v33, -inf  ;;  %v654_v36 = vsel %vm247_vm4, %v653_v35, -inf }
 0x6d8   :  { %754 = vmax.xlane.f32.xlu0 %v753_v34 }
 0x6dc   :  { %655 = vmax.xlane.f32.xlu0 %v654_v36 }
 0x6e0   :  { %v767_v37 = vpop.permute.xlu1 %766 }
 0x6e1   :  { %1371 = vmatpush3.msra.mxu0 %v767_v37 }
 0x6e2   :  { %1386 = vmatprep.subr.mxu0 %v1442_v0 }
 0x761   :  { %v755_v38 = vpop.xlane.xlu0 %754 }
 0x762   :  { %v756_v39 = vsub.f32 %v752_v33, %v755_v38 }
 0x764   :  { %v757_v40 = vmul.f32 1.442695, %v756_v39 }
 0x765   :  { %v656_v41 = vpop.xlane.xlu0 %655 }
 0x766   :  { %1426 = vpow2.f32 %v757_v40  ;;  %v657_v42 = vsub.f32 %v653_v35, %v656_v41 }
 0x768   :  { %v658_v43 = vmul.f32 1.442695, %v657_v42 }
 0x76a   :  { %1428 = vpow2.f32 %v658_v43 }
 0x773   :  { %v1427_v44 = vpop.eup %1426 }
 0x774   :  { %1373 = vmatmul.mubr.msk.f32.vlgmr.msra.gmra.mxu0 %vm247_vm4, %v1427_v44  ;;  %v759_v45 = vsel %vm247_vm4, %v1427_v44, 0.0 }
 0x775   :  { %760 = vadd.xlane.f32.xlu0 %v759_v45  ;;  %1390 = vmatprep.mubr.msk.f32.mxu0 %vm1443_vm2, %v1442_v0 }
 0x776   :  { %1387 = vmatpush3.msra.mxu0 %v861_v56 }
 0x777   :  { %v1429_v46 = vpop.eup %1428  ;;  %1388 = vmatprep.subr.mxu0 %v1442_v0 }
 0x778   :  { %1368 = vmatmul.mubr.msk.f32.vlgmr.msra.gmra.mxu1 %vm247_vm4, %v1429_v46  ;;  %v660_v47 = vsel %vm247_vm4, %v1429_v46, 0.0  ;;  %1389 = vmatpush3.msra.mxu0 %v860_v57 }
 0x779   :  { %661 = vadd.xlane.f32.xlu0 %v660_v47  ;;  %1383 = vmatprep.mubr.msk.f32.mxu1 %vm1443_vm2, %v1442_v0 }
 0x77a   :  { %1376 = vmatpush3.msra.mxu1 %v859_v48  ;;  %1393 = vmatprep.subr.mxu0 %v1442_v0 }
 0x77b   :  { %1377 = vmatprep.subr.mxu1 %v1442_v0 }
 0x77c   :  { %1378 = vmatpush3.msra.mxu1 %v858_v51 }
 0x77d   :  { %1379 = vmatprep.subr.mxu1 %v1442_v0 }
 0x77e   :  { %1380 = vmatpush3.msra.mxu1 %v857_v53 }
 0x77f   :  { %1381 = vmatprep.subr.mxu1 %v1442_v0 }
 0x780   :  { %1382 = vmatpush3.msra.mxu1 %v856_v54 }
 0x781   :  { %1398 = vmatprep.subr.mxu1 %v1442_v0 }
 0x7fe   :  { %v761_v49 = vpop.xlane.xlu0 %760 }
 0x7ff   :  { %1430 = vrcp.f32 %v761_v49 }
 0x802   :  { %v662_v1 = vpop.xlane.xlu0 %661 }
 0x803   :  { %1432 = vrcp.f32 %v662_v1 }
 0x80c   :  { %v1431_v50 = vpop.eup %1430 }
 0x80d   :  { %v763_v52 = vmul.f32 %v1431_v50, %v761_v49 }
 0x80f   :  { %v764_v55 = vsub.f32 2.0, %v763_v52 }
 0x810   :  { %v1433_v2 = vpop.eup %1432 }
 0x811   :  { %v765_v58 = vmul.f32 %v1431_v50, %v764_v55  ;;  %v664_v3 = vmul.f32 %v1433_v2, %v662_v1 }
 0x813   :  { %v665_v4 = vsub.f32 2.0, %v664_v3 }
 0x815   :  { %v666_v5 = vmul.f32 %v1433_v2, %v665_v4 }
 0x834   :  { %v838_v59 = vpop.f32.mrf.mxu0 }
 0x835   :  { %v842_v60 = vmul.f32 %v838_v59, %v765_v58  ;;  %v1279_v58 = vld [vmem:[%s1703_s10] ss:$0 sm:$0xff] }
 0x836   :  { %v1374_v61 = vpop.f32.mrf.mxu0 }
 0x837   :  { %844 = vrot.lane.b32.xlu0 %v842_v60, %s1448_s23 }
 0x838   :  { %v736_v62 = vpop.f32.mrf.mxu1 }
 0x839   :  { %v740_v6 = vmul.f32 %v736_v62, %v666_v5 }
 0x83a   :  { %v1369_v63 = vpop.f32.mrf.mxu1 }
 0x8a9   :  { %v845_v9 = vpop.permute.xlu0 %844 }
 0x8aa   :  { %v847_v11 = vsel %vm441_vm5, %v740_v6, %v845_v9 }
 0x8ab   :  { %v854_v12 = vadd.f32 %v1274_v8, %v847_v11 }
 0x8ad   :  { %v855_v13 = vmax.f32 %v854_v12, 0.0 }
 0x8af   :  { %1384 = vmatmul.mubr.msk.f32.vlgmr.msra.gmra.mxu1 %vm125_vm3, %v855_v13 }
 0x8b0   :  { %1400 = vmatprep.mubr.msk.f32.mxu1 %vm1443_vm2, %v1442_v0 }
 0x96f   :  { %v932_v14 = vpop.f32.mrf.mxu1 }
 0x970   :  { %1391 = vmatmul.mubr.msk.f32.vlgmr.msra.gmra.mxu0 %vm441_vm5, %v932_v14 }
 0x971   :  { %1394 = vmatpush3.msra.mxu0 %v932_v14  ;;  %v1385_v15 = vpop.f32.mrf.mxu1  ;;  %1395 = vmatprep.mubr.msk.f32.mxu0 %vm1443_vm2, %v1442_v0 }
 0xa30   :  { %v1005_v16 = vpop.f32.mrf.mxu0 }
 0xa31   :  { %1010 = vrot.lane.b32.xlu1 %v1005_v16, %s1446_s3  ;;  %s1450_s3 = smov 8  }
 0xa32   :  { %v1392_v19 = vpop.f32.mrf.mxu0 }
 0xa35   :  { %1145 = vperm.xlu1 %1413, %v1005_v16  }
 0xa39   :  { %1416 = vset.pattern.permute.xlu1 %v1445_v10 }
 0xa3a   :  { %1046 = vperm.xlu1 %1416, %v1005_v16  }
 0xaa3   :  { %v1011_v20 = vpop.permute.xlu1 %1010 }
 0xaa4   :  { %1013 = vxpose.xlu0.b32.start.end [1/1] (short) (narrow) %v1011_v20, 8 }
 0xab0   :  { %v1146_v21 = vpop.permute.xlu1 %1145 }
 0xab5   :  { %v1047_v24 = vpop.permute.xlu1 %1046 }
 0xacd   :  { %1169 = vrot.lane.b32.xlu0 %v932_v14, %s1449_s7 }
 0xace   :  { %1417 = vset.pattern.permute.xlu0 %v1444_v7 }
 0xb20   :  { %v1029_v22 = vpop.trf.xlu0 }
 0xb21   :  { %v1052_v23 = vrot.slane %v1029_v22, %v1551_v17  ;;  %v1151_v0 = vrot.slane %v1029_v22, %v1553_v18 }
 0xb23   :  { %v1053_v25 = vadd.f32 %v1052_v23, %v1047_v24  ;;  %v1152_v26 = vadd.f32 %v1151_v0, %v1146_v21 }
 0xb25   :  { %v1054_v27 = vmul.f32 0.2, %v1053_v25  ;;  %v1153_v29 = vmul.f32 0.2, %v1152_v26 }
 0xb27   :  { %v1154_v30 = vmax.f32 %v1152_v26, %v1153_v29  ;;  %v1055_v10 = vmax.f32 %v1053_v25, %v1054_v27 }
 0xb29   :  { %v1155_v31 = vadd.f32 %v1154_v30, %v1560_v28  ;;  %v1056_v33 = vadd.f32 %v1055_v10, %v1560_v28 }
 0xb2b   :  { %v1156_v32 = vsel %vm247_vm4, %v1155_v31, -inf  ;;  %v1057_v7 = vsel %vm247_vm4, %v1056_v33, -inf }
 0xb2c   :  { %1157 = vmax.xlane.f32.xlu1 %v1156_v32 }
 0xb30   :  { %1058 = vmax.xlane.f32.xlu1 %v1057_v7 }
 0xb3f   :  { %v1170_v17 = vpop.permute.xlu0 %1169 }
 0xb40   :  { %1399 = vmatpush3.msra.mxu1 %v1170_v17 }
 0xbb5   :  { %v1158_v18 = vpop.xlane.xlu1 %1157 }
 0xbb6   :  { %v1159_v34 = vsub.f32 %v1155_v31, %v1158_v18 }
 0xbb8   :  { %v1160_v35 = vmul.f32 1.442695, %v1159_v34 }
 0xbb9   :  { %v1059_v36 = vpop.xlane.xlu1 %1058 }
 0xbba   :  { %1434 = vpow2.f32 %v1160_v35  ;;  %v1060_v37 = vsub.f32 %v1056_v33, %v1059_v36 }
 0xbbc   :  { %v1061_v38 = vmul.f32 1.442695, %v1060_v37 }
 0xbbe   :  { %1436 = vpow2.f32 %v1061_v38 }
 0xbc7   :  { %v1435_v39 = vpop.eup %1434 }
 0xbc8   :  { %1401 = vmatmul.mubr.msk.f32.vlgmr.msra.gmra.mxu1 %vm247_vm4, %v1435_v39  ;;  %v1162_v40 = vsel %vm247_vm4, %v1435_v39, 0.0 }
 0xbc9   :  { %1163 = vadd.xlane.f32.xlu1 %v1162_v40 }
 0xbcb   :  { %v1437_v28 = vpop.eup %1436 }
 0xbcc   :  { %1396 = vmatmul.mubr.msk.f32.vlgmr.msra.gmra.mxu0 %vm247_vm4, %v1437_v28  ;;  %v1063_v41 = vsel %vm247_vm4, %v1437_v28, 0.0 }
 0xbcd   :  { %1064 = vadd.xlane.f32.xlu1 %v1063_v41 }
 0xc52   :  { %v1164_v42 = vpop.xlane.xlu1 %1163 }
 0xc53   :  { %1438 = vrcp.f32 %v1164_v42 }
 0xc56   :  { %v1065_v52 = vpop.xlane.xlu1 %1064 }
 0xc57   :  { %1440 = vrcp.f32 %v1065_v52 }
 0xc60   :  { %v1439_v43 = vpop.eup %1438 }
 0xc61   :  { %v1166_v44 = vmul.f32 %v1439_v43, %v1164_v42 }
 0xc63   :  { %v1167_v45 = vsub.f32 2.0, %v1166_v44 }
 0xc64   :  { %v1441_v53 = vpop.eup %1440 }
 0xc65   :  { %v1168_v46 = vmul.f32 %v1439_v43, %v1167_v45  ;;  %v1067_v54 = vmul.f32 %v1441_v53, %v1065_v52 }
 0xc67   :  { %v1068_v55 = vsub.f32 2.0, %v1067_v54 }
 0xc69   :  { %v1069_v56 = vmul.f32 %v1441_v53, %v1068_v55 }
 0xc88   :  { %v1241_v47 = vpop.f32.mrf.mxu1 }
 0xc89   :  { %v1245_v48 = vmul.f32 %v1241_v47, %v1168_v46 }
 0xc8a   :  { %v1402_v49 = vpop.f32.mrf.mxu1 }
 0xc8b   :  { %1247 = vrot.lane.b32.xlu1 %v1245_v48, %s1450_s3 }
 0xc8c   :  { %v1139_v50 = vpop.f32.mrf.mxu0 }
 0xc8d   :  { %v1143_v57 = vmul.f32 %v1139_v50, %v1069_v56 }
 0xc8e   :  { %v1397_v51 = vpop.f32.mrf.mxu0 }
 0xcfd   :  { %v1248_v59 = vpop.permute.xlu1 %1247 }
 0xcfe   :  { %v1250_v60 = vsel %vm247_vm4, %v1143_v57, %v1248_v59 }
 0xcff   :  { %v1257_v61 = vadd.f32 %v1279_v58, %v1250_v60 }
 0xd01   :  { %v1258_v62 = vsel %vm441_vm5, %v1257_v61, 0.0 }
 0xd02   :  { %1259 = vst [vmem:[%s1704_s11] sm:$0xff] %v1258_v62 }

</bundles_post_ra>
